<compile_context>
chip_gen: v7x
topology: tpu7x:2x2x1
jax: 0.10.0
libtpu: 0.0.40
codegen_flags: <defaults>
</compile_context>

<pallas_src>
import math

import jax
import jax.numpy as jnp
import numpy as np
from jax.experimental import pallas as pl
from jax.experimental.pallas import tpu as pltpu


# --------------------------------------------------------------------------- kernel
def _resample_kernel(x_ref, a_ref, m_ref, o_ref):
    """out[b] = A @ x[b] @ M for a block of images, entirely in VMEM / on the MXU."""
    x = x_ref[...].astype(jnp.float32)                # (tb, Hi, Wi) f32 (cast in VMEM)
    a = a_ref[...]                                    # (Ho, Hi)     f32
    m = m_ref[...]                                    # (Wi, Wo)     f32
    tb = x.shape[0]
    m_b = jnp.broadcast_to(m, (tb,) + m.shape)
    a_b = jnp.broadcast_to(a, (tb,) + a.shape)
    # W resample: (tb,Hi,Wi) x (tb,Wi,Wo) -> (tb,Hi,Wo)
    t = jnp.einsum(
        "bhw,bwo->bho", x, m_b,
        preferred_element_type=jnp.float32,
        precision=jax.lax.Precision.HIGHEST,
    )
    # H resample: (tb,Ho,Hi) x (tb,Hi,Wo) -> (tb,Ho,Wo)
    y = jnp.einsum(
        "bih,bho->bio", a_b, t,
        preferred_element_type=jnp.float32,
        precision=jax.lax.Precision.HIGHEST,
    )
    o_ref[...] = y.astype(o_ref.dtype)                # write back in native dtype


def _pick_block(batch, per_image_bytes, budget_bytes=4 * 1024 * 1024):
    """Largest divisor of `batch` that fits the per-step VMEM budget and, when
    possible, leaves >= 2 grid steps (pipelining + megacore sharding on v7x)."""
    cap = max(1, budget_bytes // max(per_image_bytes, 1))
    if batch >= 2:
        cap = min(cap, batch // 2)
    cap = max(1, min(cap, batch))
    best = 1
    for d in range(1, cap + 1):
        if batch % d == 0:
            best = d
    return best


def _pallas_resample(x3, a_mat, m_mat):
    """x3: (B, Hi, Wi) native dtype; a_mat: (Ho, Hi) f32; m_mat: (Wi, Wo) f32
    -> (B, Ho, Wo) in x3.dtype."""
    B, Hi, Wi = x3.shape
    Ho = a_mat.shape[0]
    Wo = m_mat.shape[1]
    in_bytes = jnp.dtype(x3.dtype).itemsize
    # per-image VMEM footprint: native input block + f32 cast + W-resampled temp
    # + output block + broadcast weight copies
    per_image = (
        Hi * Wi * in_bytes                 # input block (native dtype)
        + 4 * Hi * Wi                      # f32 cast of the input
        + 4 * Hi * Wo                      # intermediate t
        + Ho * Wo * in_bytes               # output block (native dtype)
        + 4 * (Ho * Hi + Wi * Wo)          # broadcast interpolation matrices
    )
    tb = _pick_block(B, per_image)
    grid = (B // tb,)
    return pl.pallas_call(
        _resample_kernel,
        out_shape=jax.ShapeDtypeStruct((B, Ho, Wo), x3.dtype),
        grid=grid,
        in_specs=[
            pl.BlockSpec((tb, Hi, Wi), lambda i: (i, 0, 0)),
            pl.BlockSpec((Ho, Hi), lambda i: (0, 0)),
            pl.BlockSpec((Wi, Wo), lambda i: (0, 0)),
        ],
        out_specs=pl.BlockSpec((tb, Ho, Wo), lambda i: (i, 0, 0)),
        compiler_params=pltpu.CompilerParams(
            dimension_semantics=("parallel",),
        ),
    )(x3, a_mat, m_mat)


# ------------------------------------------------------------- interpolation matrices
def _nearest_matrix(in_size, out_size):
    # PyTorch 'nearest': src = floor(dst * in/out) (asymmetric, legacy nearest).
    dst = np.arange(out_size)
    src = np.clip(np.floor(dst * (in_size / out_size)).astype(np.int64), 0, in_size - 1)
    mat = np.zeros((out_size, in_size), dtype=np.float32)
    mat[dst, src] = 1.0
    return mat


def _linear_matrix(in_size, out_size, align_corners):
    dst = np.arange(out_size, dtype=np.float64)
    if align_corners:
        scale = (in_size - 1) / (out_size - 1) if out_size > 1 else 0.0
        src = dst * scale
    else:
        src = (dst + 0.5) * (in_size / out_size) - 0.5
        src = np.maximum(src, 0.0)
    i0 = np.clip(np.floor(src).astype(np.int64), 0, in_size - 1)
    i1 = np.minimum(i0 + 1, in_size - 1)
    w1 = (src - i0).astype(np.float32)
    w0 = (1.0 - w1).astype(np.float32)
    mat = np.zeros((out_size, in_size), dtype=np.float32)
    rows = np.arange(out_size)
    np.add.at(mat, (rows, i0), w0)
    np.add.at(mat, (rows, i1), w1)
    return mat


def _resolve_out_size(in_hw, size, scale_factor):
    Hi, Wi = in_hw
    if size is not None:
        if isinstance(size, (tuple, list)):
            return int(size[0]), int(size[1])
        return int(size), int(size)
    if scale_factor is None:
        raise ValueError("either size or scale_factor must be defined")
    if isinstance(scale_factor, (tuple, list)):
        sh, sw = float(scale_factor[0]), float(scale_factor[1])
    else:
        sh = sw = float(scale_factor)
    return int(math.floor(Hi * sh)), int(math.floor(Wi * sw))


# --------------------------------------------------------------------------- module
def upsample2d(x, size=None, scale_factor=None, mode="nearest", align_corners=False):
    """Pallas equivalent of F.interpolate for 4-D NCHW inputs."""
    if x.ndim != 4:
        # TODO(synk): only 4-D (NCHW) interpolate is implemented; 3-D/5-D inputs are not.
        raise NotImplementedError("upsample2d only supports 4-D NCHW inputs")
    N, C, Hi, Wi = x.shape
    Ho, Wo = _resolve_out_size((Hi, Wi), size, scale_factor)

    if mode == "nearest":
        a_mat = _nearest_matrix(Hi, Ho)
        m_mat = _nearest_matrix(Wi, Wo).T
    elif mode in ("bilinear", "linear"):
        ac = bool(align_corners) if align_corners is not None else False
        a_mat = _linear_matrix(Hi, Ho, ac)
        m_mat = _linear_matrix(Wi, Wo, ac).T
    else:
        # TODO(synk): 'bicubic' / 'area' / 'nearest-exact' modes are not implemented.
        raise NotImplementedError(f"mode={mode!r} is not implemented")

    x3 = x.reshape(N * C, Hi, Wi)                       # native dtype, no extra HBM pass
    out = _pallas_resample(
        x3,
        jnp.asarray(a_mat),
        jnp.asarray(np.ascontiguousarray(m_mat)),
    )
    return out.reshape(N, C, Ho, Wo)                    # already in x.dtype


class Upsample:
    """Mirror of the PyTorch Upsample module: forward(x) == F.interpolate(x, ...)."""

    def __init__(self, size=None, scale_factor=None, mode="nearest", align_corners=False):
        self.size = size
        self.scale_factor = scale_factor
        self.mode = mode
        self.align_corners = align_corners

    def __call__(self, x):
        return upsample2d(
            x,
            size=self.size,
            scale_factor=self.scale_factor,
            mode=self.mode,
            align_corners=self.align_corners,
        )


# ----------------------------------------------------------------------------- main
if __name__ == "__main__":
    key = jax.random.PRNGKey(0)
    N, C, H, W = 2, 4, 16, 16
    x = jax.random.normal(key, (N, C, H, W), jnp.float32)

    # Default module configuration: nearest-neighbour upsampling, scale_factor=2.
    up = Upsample(scale_factor=2, mode="nearest")
    out = jax.block_until_ready(jax.jit(lambda t: up(t))(x))
    assert out.shape == (N, C, 2 * H, 2 * W), out.shape
    assert out.dtype == jnp.float32

    # Exact nearest-2x reference (one-hot matmul at HIGHEST precision is an exact gather).
    ref = jnp.repeat(jnp.repeat(x, 2, axis=2), 2, axis=3)
    assert jnp.allclose(out, ref, rtol=1e-6, atol=1e-6), float(jnp.max(jnp.abs(out - ref)))

    # Bilinear path (the mode nnU-Net uses for its 2-D Upsample): shape/finiteness check.
    up_bl = Upsample(scale_factor=2, mode="bilinear", align_corners=False)
    out_bl = jax.block_until_ready(jax.jit(lambda t: up_bl(t))(x))
    assert out_bl.shape == (N, C, 2 * H, 2 * W)
    assert out_bl.dtype == jnp.float32
    assert bool(jnp.all(jnp.isfinite(out_bl)))

    # Native-dtype path (bf16 in / bf16 out, no wrapper casts): nearest is still exact.
    x_bf16 = x.astype(jnp.bfloat16)
    out_bf16 = jax.block_until_ready(jax.jit(lambda t: up(t))(x_bf16))
    assert out_bf16.dtype == jnp.bfloat16
    ref_bf16 = jnp.repeat(jnp.repeat(x_bf16, 2, axis=2), 2, axis=3)
    assert jnp.array_equal(out_bf16, ref_bf16)

    print("KERNEL_OK")
</pallas_src>

<mosaic_0001>
module attributes {stable_mosaic.version = 11 : i64} {
  func.func @_resample_kernel(%arg0: i32, %arg1: memref<4x16x16xf32, #tpu.memory_space<vmem>>, %arg2: memref<32x16xf32, #tpu.memory_space<vmem>>, %arg3: memref<16x32xf32, #tpu.memory_space<vmem>>, %arg4: memref<4x32x32xf32, #tpu.memory_space<vmem>>) attributes {dimension_semantics = [#tpu.dimension_semantics<parallel>], iteration_bounds = array<i64: 2>, scalar_prefetch = 0 : i64, scratch_operands = 0 : i64, tpu.core_type = #tpu.core_type<tc>, window_params = [{transform_indices = @transform_0, window_bounds = array<i64: 4, 16, 16>}, {pipeline_mode = #tpu.pipeline_mode<synchronous>, transform_indices = @transform_1, window_bounds = array<i64: 32, 16>}, {pipeline_mode = #tpu.pipeline_mode<synchronous>, transform_indices = @transform_2, window_bounds = array<i64: 16, 32>}, {transform_indices = @transform_3, window_bounds = array<i64: 4, 32, 32>}]} {
    %c0 = arith.constant 0 : index
    %c0_0 = arith.constant 0 : index
    %c0_1 = arith.constant 0 : index
    %0 = vector.load %arg1[%c0, %c0_0, %c0_1] : memref<4x16x16xf32, #tpu.memory_space<vmem>>, vector<4x16x16xf32>
    %c0_2 = arith.constant 0 : index
    %c0_3 = arith.constant 0 : index
    %1 = vector.load %arg2[%c0_2, %c0_3] : memref<32x16xf32, #tpu.memory_space<vmem>>, vector<32x16xf32>
    %c0_4 = arith.constant 0 : index
    %c0_5 = arith.constant 0 : index
    %2 = vector.load %arg3[%c0_4, %c0_5] : memref<16x32xf32, #tpu.memory_space<vmem>>, vector<16x32xf32>
    %3 = vector.shape_cast %2 : vector<16x32xf32> to vector<1x16x32xf32>
    %4 = vector.broadcast %3 : vector<1x16x32xf32> to vector<4x16x32xf32>
    %5 = vector.shape_cast %1 : vector<32x16xf32> to vector<1x32x16xf32>
    %6 = vector.broadcast %5 : vector<1x32x16xf32> to vector<4x32x16xf32>
    "tpu.trace_start"() <{level = 10 : i32, message = "bhw,bwo->bho"}> : () -> ()
    %cst = arith.constant dense<0.000000e+00> : vector<4x16x32xf32>
    %7 = tpu.matmul %0, %4, %cst {dimension_numbers = #tpu.dot_dimension_numbers<[2], [1], [1], [2], [0, 0, 0, 1, 1, 2], [0], [0]>, precision = #tpu.contract_precision<fp32>} : vector<4x16x16xf32>, vector<4x16x32xf32>, vector<4x16x32xf32> -> vector<4x16x32xf32>
    "tpu.trace_stop"() : () -> ()
    "tpu.trace_start"() <{level = 10 : i32, message = "bih,bho->bio"}> : () -> ()
    %cst_6 = arith.constant dense<0.000000e+00> : vector<4x32x32xf32>
    %8 = tpu.matmul %6, %7, %cst_6 {dimension_numbers = #tpu.dot_dimension_numbers<[2], [1], [1], [2], [0, 0, 0, 1, 1, 2], [0], [0]>, precision = #tpu.contract_precision<fp32>} : vector<4x32x16xf32>, vector<4x16x32xf32>, vector<4x32x32xf32> -> vector<4x32x32xf32>
    "tpu.trace_stop"() : () -> ()
    %c0_7 = arith.constant 0 : index
    %c0_8 = arith.constant 0 : index
    %c0_9 = arith.constant 0 : index
    %9 = vector.load %arg4[%c0_7, %c0_8, %c0_9] : memref<4x32x32xf32, #tpu.memory_space<vmem>>, vector<4x32x32xf32>
    tpu.vector_store %arg4[%c0_7, %c0_8, %c0_9], %8 {strides = array<i32>} : memref<4x32x32xf32, #tpu.memory_space<vmem>>, vector<4x32x32xf32>,
    return
  }
  func.func @transform_0(%arg0: i32) -> (i32, i32, i32) {
    %c0_i32 = arith.constant 0 : i32
    %c0_i32_0 = arith.constant 0 : i32
    %c0_i32_1 = arith.constant 0 : i32
    return %arg0, %c0_i32, %c0_i32_0 : i32, i32, i32
  }
  func.func @transform_1(%arg0: i32) -> (i32, i32) {
    %c0_i32 = arith.constant 0 : i32
    %c0_i32_0 = arith.constant 0 : i32
    %c0_i32_1 = arith.constant 0 : i32
    return %c0_i32, %c0_i32_0 : i32, i32
  }
  func.func @transform_2(%arg0: i32) -> (i32, i32) {
    %c0_i32 = arith.constant 0 : i32
    %c0_i32_0 = arith.constant 0 : i32
    %c0_i32_1 = arith.constant 0 : i32
    return %c0_i32, %c0_i32_0 : i32, i32
  }
  func.func @transform_3(%arg0: i32) -> (i32, i32, i32) {
    %c0_i32 = arith.constant 0 : i32
    %c0_i32_0 = arith.constant 0 : i32
    %c0_i32_1 = arith.constant 0 : i32
    return %arg0, %c0_i32, %c0_i32_0 : i32, i32, i32
  }
}

</mosaic_0001>

<bundles_post_ra>
// kernel: _lambda_.1
= control target key start
LH: loop header
LB: loop body
LE: loop exit
PB: predicated region body
PF: predicated region fallthrough
CT: control target
= control target key end

     0   :  { %8 = vsyncpa [#allocation3], 0  ;;  %s6588_s0 = inlined_call_operand.hbm [shape: f32[8,16,16], index: 0, kind: input, shape index: {}]   ;;  %s6589_s1 = inlined_call_operand.hbm [shape: f32[32,16], index: 1, kind: input, shape index: {}]   ;;  %s6590_s2 = inlined_call_operand.hbm [shape: f32[16,32], index: 2, kind: input, shape index: {}]   ;;  %s6591_s3 = inlined_call_operand.hbm [shape: f32[8,32,32], index: 3, kind: output, shape index: {}]  }
   0x1   :  { %10 = vsyncpa [#allocation3 + $0x1], 0 }
   0x2   :  { %11 = vsyncpa [#allocation6], 0 }
   0x3   :  { %12 = vsyncpa [#allocation4], 0 }
   0x4   :  { %14 = vsyncpa [#allocation4 + $0x1], 0  ;;  %s5997_s12 = smov 0   ;;  %s5999_s13 = smov 0  }
   0x5   :  { %s6001_s14 = smov 0   ;;  %s6003_s15 = smov 0  }
   0x6 LB: > { %s6018_s16 = sadd.s32 4294967295, %s5967_s15   ;;  %s4756_s17 = sadd.s32 4294967294, %s5967_s15   ;;  %s5967_s15 = sphi %s6003_s15, %s6611_s15   ;;  %s5963_s14 = sphi %s6001_s14, %s6610_s14   ;;  %s5959_s13 = sphi %s5999_s13, %s6609_s13   ;;  %s5955_s12 = sphi %s5997_s12, %s6608_s12  }
   0x7   : > { %p40_p0 = scmp.ne.s32.totalorder %s5959_s13, %s5955_s12  ;;  %p6592_p1 = scmp.eq.s32.totalorder %s6018_s16, 0 }
   0x8   : > { %p112_p3 = scmp.eq.s32.totalorder %s4756_s17, 1  ;;  %p4757_p5 = scmp.ge.s32.totalorder %s5967_s15, 1 }
   0x9   : > { %p6027_p4 = por %p6592_p1, %p40_p0  ;;  %p119_p7 = scmp.lt.s32.totalorder %s5967_s15, 3 }
   0xa   : > { %p6032_p6 = por %p112_p3, %p40_p0  ;;  %s5969_s21 = smov [#allocation5]  }
   0xb   : > { %s6595_s18 = scalar_select %p6027_p4, 1, 0 }
   0xc   : > { %s6596_s19 = scalar_select %p6032_p6, 1, 0 }
   0xd   : > { %p6037_p8 = pnand %p4757_p5, %p119_p7  ;;  %s131_s22 = sshll.u32 %s5969_s21, 4  ;;  %s6041_s22 = int_to_ptr.vmem [resolvable:$true] %s131_s22 }
   0xe   : > { %s5970_s24 = smov [#allocation7]   ;;  %s5811_s28 = scalar_lea.hbm %s6589_s1, 512 }
   0xf   : > { %p5752_p9 = pneg %p6037_p8  ;;  %s144_s25 = sshll.u32 %s5970_s24, 4  ;;  %s6052_s25 = int_to_ptr.vmem [resolvable:$true] %s144_s25 }
  0x10   : > { %p5812_p12 = scmp.ne.s32.totalorder %s6589_s1, %s5811_s28  ;;  %p5818_p5 = scmp.lt.u32.totalorder %s5811_s28, %s6589_s1 }
  0x11   : > { %p6048_p11 = pnand %p5752_p9, %p6592_p1 }
  0x13   : > { %p5813_p13 = pneg %p6048_p11 }
  0x15   : > { %p5814_p0 = pnand %p5813_p13, %p5812_p12 }
  0x17   : > { %p5815_p3 = pneg %p5814_p0 }
  0x19   : > { %p5820_p7 = pnand %p5818_p5, %p5815_p3 }
  0x1b   : > { %5823 = shalt.err (!%p5820_p7)
}
  0x1c   : > { %s5824_s6 = scalar_lea.vmem %s6041_s22, 512  ;;  %p5832_p2 = scmp.lt.s32.totalorder %s6041_s22, %s6041_s22 }
  0x1d   : > { %p5825_p9 = scmp.ne.s32.totalorder %s6041_s22, %s5824_s6  ;;  %p5833_p12 = scmp.lt.s32.totalorder %s5824_s6, %s5824_s6 }
  0x1f   : > { %p5827_p10 = pnand %p5825_p9, %p5813_p13  ;;  %p5834_p0 = por %p5833_p12, %p5832_p2 }
  0x21   : > { %p5828_p1 = pneg %p5827_p10 }
  0x23   : > { %p5835_p6 = pnand %p5834_p0, %p5828_p1 }
  0x25   : > { %5838 = shalt.err (!%p5835_p6)
}
  0x26   : > { %s5971_s7 = smov 128   ;;  %s5972_s8 = smov 8  }
  0x27   : > { %5755 = dma.hbm_to_vmem [thread:$0]  (!%p6048_p11), %s6589_s1, 512, %s6041_s22, [#allocation6], %s5971_s7, %s5971_s7, %s5972_s8  }
  0x28   : > { %s5839_s21 = scalar_lea.hbm %s6590_s2, 256 }
  0x29   : > { %p5840_p1 = scmp.ne.s32.totalorder %s6590_s2, %s5839_s21  ;;  %p5846_p10 = scmp.lt.u32.totalorder %s5839_s21, %s6590_s2 }
  0x2b   : > { %p5842_p2 = pnand %p5840_p1, %p5813_p13 }
  0x2d   : > { %p5843_p6 = pneg %p5842_p2 }
  0x2f   : > { %p5848_p3 = pnand %p5846_p10, %p5843_p6 }
  0x31   : > { %5851 = shalt.err (!%p5848_p3)
}
  0x32   : > { %s5852_s22 = scalar_lea.vmem %s6052_s25, 256  ;;  %p5860_p12 = scmp.lt.s32.totalorder %s6052_s25, %s6052_s25 }
  0x33   : > { %p5853_p5 = scmp.ne.s32.totalorder %s6052_s25, %s5852_s22  ;;  %p5861_p0 = scmp.lt.s32.totalorder %s5852_s22, %s5852_s22 }
  0x35   : > { %p5855_p7 = pnand %p5853_p5, %p5813_p13  ;;  %p5862_p1 = por %p5861_p0, %p5860_p12 }
  0x37   : > { %p5856_p9 = pneg %p5855_p7 }
  0x39   : > { %p5863_p2 = pnand %p5862_p1, %p5856_p9 }
  0x3b   : > { %5866 = shalt.err (!%p5863_p2)
}
  0x3c   : > { %5758 = dma.hbm_to_vmem [thread:$0]  (!%p6048_p11), %s6590_s2, 256, %s6052_s25, [#allocation6], %s5971_s7, %s5971_s7, %s5972_s8  }
  0x3d   : > { %s6113_s23 = sadd.s32 1, %s5967_s15   ;;  %s27_s4 = sadd.s32 1, %s5963_s14 }
  0x3e   : > { %s24_s5 = ssub.s32 %s5967_s15, %s6113_s23  ;;  %p34_p13 = scmp.ne.s32.totalorder %s5963_s14, %s5959_s13 }
  0x3f   : > { %p25_p6 = scmp.eq.s32.totalorder %s24_s5, 0  ;;  %p35_p10 = scmp.eq.s32.totalorder %s5967_s15, 0 }
  0x40   : > { %p6599_p3 = scmp.eq.s32.totalorder %s6018_s16, 1  ;;  %p5769_p7 = scmp.lt.s32.totalorder %s5967_s15, 2 }
  0x41   : > { %s6129_s9 = scalar_select %p25_p6, %s5963_s14, %s27_s4  }
  0x42   : > { %p6123_p5 = por %p6599_p3, %p34_p13  ;;  %p36_p9 = por %p35_p10, %p34_p13 }
  0x43   : > { %s158_s10 = sand.u32 1, %s5963_s14   ;;  %s4777_s25 = sshll.u32 %s5967_s15, 10 }
  0x44   : > { %s6600_s6 = scalar_select %p6123_p5, 1, 0 }
  0x45   : > { %s4761_s11 = sshll.u32 %s158_s10, 6  ;;  %s6136_s24 = scalar_lea.hbm %s6588_s0, %s4777_s25 }
  0x46   : > { %s162_s26 = scalar_lea.vmem [#allocation2], %s4761_s11  ;;  %p6140_p11 = pnand %p5769_p7, %p36_p9 }
  0x47   : > { %s170_s27 = sshll.u32 %s162_s26, 4  ;;  %s6144_s22 = scalar_lea.sflag [#allocation3], %s158_s10  ;;  %s6138_s27 = int_to_ptr.vmem [resolvable:$true] %s170_s27 }
  0x48   : > { %s5867_s29 = scalar_lea.hbm %s6136_s24, 1024  ;;  %p5869_p0 = pneg %p6140_p11 }
  0x49   : > { %p5868_p12 = scmp.ne.s32.totalorder %s6136_s24, %s5867_s29  ;;  %s5872_s5 = scalar_lea.hbm %s6588_s0, 2048 }
  0x4a   : > { %p5873_p13 = scmp.lt.u32.totalorder %s6136_s24, %s6588_s0  ;;  %p5874_p6 = scmp.lt.u32.totalorder %s5872_s5, %s5867_s29 }
  0x4b   : > { %p5870_p1 = pnand %p5869_p0, %p5868_p12  ;;  %p5876_p3 = scmp.lt.u32.totalorder %s5867_s29, %s6136_s24 }
  0x4c   : > { %p5875_p10 = por %p5874_p6, %p5873_p13 }
  0x4d   : > { %p5871_p2 = pneg %p5870_p1 }
  0x4e   : > { %p5877_p7 = por %p5876_p3, %p5875_p10 }
  0x50   : > { %p5878_p9 = pnand %p5877_p7, %p5871_p2 }
  0x52   : > { %5881 = shalt.err (!%p5878_p9)
}
  0x53   : > { %s5882_s10 = scalar_lea.vmem %s6138_s27, 1024  ;;  %s5973_s17 = smov [#allocation2]  }
  0x54   : > { %p5883_p12 = scmp.ne.s32.totalorder %s6138_s27, %s5882_s10  ;;  %s5887_s21 = sshll.u32 %s5973_s17, 4  ;;  %s5888_s21 = int_to_ptr.vmem [resolvable:$false] %s5887_s21 }
  0x55   : > { %s5889_s26 = scalar_lea.vmem %s5888_s21, 2048  ;;  %p5890_p4 = scmp.lt.s32.totalorder %s6138_s27, %s5888_s21 }
  0x56   : > { %p5885_p1 = pnand %p5883_p12, %p5869_p0  ;;  %p5891_p13 = scmp.lt.s32.totalorder %s5889_s26, %s5882_s10 }
  0x58   : > { %p5886_p5 = pneg %p5885_p1  ;;  %p5892_p6 = por %p5891_p13, %p5890_p4 }
  0x5a   : > { %p5893_p10 = pnand %p5892_p6, %p5886_p5 }
  0x5c   : > { %5896 = shalt.err (!%p5893_p10)
}
  0x5d   : > { %5762 = dma.hbm_to_vmem [thread:$0]  (!%p6140_p11), %s6136_s24, 1024, %s6138_s27, %s6144_s22, %s5971_s7, %s5971_s7, %s5972_s8  }
  0x5e   : > { %182 = sbr.rel (%p6037_p8) target bundleno = 702 (0x2be), region = 32  ;;  %s6178_s29 = sand.u32 (!%p6037_p8), 1, %s5959_s13  }
  0x5f   : > { %s4766_s30 = sshll.u32 (!%p6037_p8), %s6178_s29, 6  ;;  %s185_s4 = scalar_lea.sflag (!%p6037_p8), [#allocation3], %s6178_s29 }
  0x60   : > { %s6182_s5 = scalar_lea.vmem (!%p6037_p8), [#allocation2], %s4766_s30  ;;  %p6602_p4 = scmp.ne.s32.totalorder (!%p6037_p8), %s6595_s18, 0 }
  0x65   : > { %5942 = dma.done.wait (%p6602_p4), %s185_s4, 1024  }
  0x66   : > { %5944 = vsyncadd (%p6602_p4), %s185_s4, 4294966272  ;;  %p6603_p5 = scmp.eq.s32.totalorder %s6018_s16, 0 }
  0x68   : > { %5946 = dma.done.wait (%p6603_p5), [#allocation6], 768   ;;  %p6604_p8 = pmov %p6603_p5 }
  0x69   : > { %vm235_vm0 = vcmask 130048   ;;  %v233_v0 = vld [vmem:[#allocation7] sm:$0xff]  ;;  %v234_v1 = vld [vmem:[#allocation7 + $0x8] sm:$0xff]  ;;  %v223_v6 = vld [vmem:[%s6182_s5 + $0x10] sm:$0xff]  ;;  %s4769_s18 = sshll.u32 %s6178_s29, 7  ;;  %vm4632_vm1 = vcmask 261120  }
  0x6a   : > { %5948 = vsyncadd (%p6604_p8), [#allocation6], 4294966528  ;;  %v221_v2 = vld [vmem:[%s6182_s5] sm:$0xff]  ;;  %v243_v3 = vand.u32 4294901760, %v233_v0  ;;  %v246_v4 = vand.u32 4294901760, %v234_v1  ;;  %v222_v7 = vld [vmem:[%s6182_s5 + $0x8] sm:$0xff] }
  0x6b   : > { %v237_v5 = vsel %vm235_vm0, %v221_v2, 0  ;;  %v224_v8 = vld [vmem:[%s6182_s5 + $0x18] sm:$0xff]  ;;  %v745_v10 = vsel %vm235_vm0, %v223_v6, 0  ;;  %v240_v11 = vsel %vm235_vm0, %v222_v7, 0  ;;  %v225_v44 = vld [vmem:[%s6182_s5 + $0x20] sm:$0xff]  ;;  %v227_v45 = vld [vmem:[%s6182_s5 + $0x30] sm:$0xff] }
  0x6c   : > { %v6197_v9 = vand.u32 4294901760, %v237_v5  ;;  %v748_v12 = vsel %vm235_vm0, %v224_v8, 0  ;;  %v6202_v13 = vpack.c.bf16 %v246_v4, %v243_v3  ;;  %v6204_v14 = vand.u32 4294901760, %v745_v10  ;;  %v226_v46 = vld [vmem:[%s6182_s5 + $0x28] sm:$0xff]  ;;  %v228_v48 = vld [vmem:[%s6182_s5 + $0x38] sm:$0xff]  ;;  %v229_v8 = vld [vmem:[#allocation5] sm:$0xff] }
  0x6d   : > { %v6206_v15 = vand.u32 4294901760, %v240_v11  ;;  %v6208_v16 = vand.u32 4294901760, %v748_v12  ;;  %v331_v18 = vsub.f32 %v233_v0, %v243_v3  ;;  %v338_v19 = vsub.f32 %v234_v1, %v246_v4  ;;  %s6503_s20 = scalar_lea.vmem [#allocation8], %s4769_s18  ;;  %s4779_s7 = sshll.u32 %s6018_s16, 11 }
  0x6e   : > { %v310_v17 = vsub.f32 %v237_v5, %v6197_v9  ;;  %5429 = vmatprep.subr.bf16.mxu0 %v6202_v13  ;;  %5453 = vmatprep.subr.bf16.mxu1 %v6202_v13  ;;  %v818_v20 = vsub.f32 %v745_v10, %v6204_v14  ;;  %v1253_v47 = vsel %vm235_vm0, %v225_v44, 0  ;;  %v1761_v49 = vsel %vm235_vm0, %v227_v45, 0  ;;  %s4664_s8 = sshll.u32 %s6503_s20, 4  ;;  %s6534_s28 = scalar_lea.hbm %s6591_s3, %s4779_s7  ;;  %s6536_s8 = int_to_ptr.vmem [resolvable:$true] %s4664_s8 }
  0x6f   : > { %v6215_v21 = vsub.f32 %v240_v11, %v6206_v15  ;;  %v6218_v22 = vsub.f32 %v748_v12, %v6208_v16  ;;  %5431 = vmatpush3.bf16.msra.mxu0 %v6202_v13  ;;  %5455 = vmatpush3.bf16.msra.mxu1 %v6202_v13  ;;  %v332_v24 = vand.u32 4294901760, %v331_v18  ;;  %v339_v25 = vand.u32 4294901760, %v338_v19  ;;  %s4650_s16 = scalar_lea.sflag [#allocation4], %s6178_s29  ;;  %s5897_s22 = scalar_lea.vmem %s6536_s8, 2048 }
  0x70   : > { %v311_v23 = vand.u32 4294901760, %v310_v17  ;;  %v819_v26 = vand.u32 4294901760, %v818_v20  ;;  %v6228_v42 = vpack.c.bf16 %v338_v19, %v331_v18  ;;  %v1256_v50 = vsel %vm235_vm0, %v226_v46, 0  ;;  %p5898_p11 = scmp.ne.s32.totalorder %s6536_s8, %s5897_s22  ;;  %p6605_p0 = scmp.ne.s32.totalorder %s6600_s6, 0 }
  0x71   : > { %v321_v27 = vand.u32 4294901760, %v6215_v21  ;;  %v829_v28 = vand.u32 4294901760, %v6218_v22  ;;  %v333_v30 = vsub.f32 %v331_v18, %v332_v24  ;;  %v340_v31 = vsub.f32 %v338_v19, %v339_v25  ;;  %v232_v19 = vld [vmem:[#allocation5 + $0x18] sm:$0xff]  ;;  %s5974_s11 = smov [#allocation8]  }
  0x72   : > { %v312_v29 = vsub.f32 %v310_v17, %v311_v23  ;;  %v820_v32 = vsub.f32 %v818_v20, %v819_v26  ;;  %v6244_v43 = vpack.c.bf16 %v339_v25, %v332_v24  ;;  %v6259_v51 = vand.u32 4294901760, %v1253_v47  ;;  %p5899_p2 = pnand %p5898_p11, %p6605_p0  ;;  %s5901_s25 = sshll.u32 %s5974_s11, 4  ;;  %s5902_s25 = int_to_ptr.vmem [resolvable:$false] %s5901_s25 }
  0x73   : > { %v322_v33 = vsub.f32 %v6215_v21, %v321_v27  ;;  %v830_v34 = vsub.f32 %v6218_v22, %v829_v28  ;;  %v334_v36 = vand.u32 4294901760, %v333_v30  ;;  %v341_v37 = vand.u32 4294901760, %v340_v31  ;;  %s5903_s10 = scalar_lea.vmem %s5902_s25, 4096  ;;  %p5904_p7 = scmp.lt.s32.totalorder %s6536_s8, %s5902_s25 }
  0x74   : > { %v313_v35 = vand.u32 4294901760, %v312_v29  ;;  %v821_v38 = vand.u32 4294901760, %v820_v32  ;;  %v1764_v52 = vsel %vm235_vm0, %v228_v48, 0  ;;  %v6262_v53 = vand.u32 4294901760, %v1761_v49  ;;  %p5900_p3 = pneg %p5899_p2  ;;  %p5905_p9 = scmp.lt.s32.totalorder %s5903_s10, %s5897_s22 }
  0x75   : > { %v323_v39 = vand.u32 4294901760, %v322_v33  ;;  %v831_v40 = vand.u32 4294901760, %v830_v34  ;;  %v6226_v41 = vpack.c.bf16 %v341_v37, %v334_v36  ;;  %v6264_v54 = vand.u32 4294901760, %v1256_v50 }
  0x76   : > { %5024 = vmatprep.mubr.f32.mxu0 %v313_v35  ;;  %5066 = vmatprep.mubr.f32.mxu1 %v821_v38  ;;  %v6267_v55 = vand.u32 4294901760, %v1764_v52  ;;  %v1326_v56 = vsub.f32 %v1253_v47, %v6259_v51  ;;  %v1834_v57 = vsub.f32 %v1761_v49, %v6262_v53  ;;  %p5906_p12 = por %p5905_p9, %p5904_p7 }
  0x77   : > { %5025 = vmatmul.mubr.f32.vlgmr.msra.gmra.mrb[0].mxu0 %v323_v39  ;;  %5067 = vmatmul.mubr.f32.vlgmr.msra.gmra.mrb[0].mxu1 %v831_v40  ;;  %v1336_v58 = vsub.f32 %v1256_v50, %v6264_v54 }
  0x78   : > { %5433 = vmatprep.subr.bf16.mxu0 %v6226_v41  ;;  %5457 = vmatprep.subr.bf16.mxu1 %v6226_v41  ;;  %v1844_v59 = vsub.f32 %v1764_v52, %v6267_v55  ;;  %v1327_v60 = vand.u32 4294901760, %v1326_v56  ;;  %v1835_v61 = vand.u32 4294901760, %v1834_v57  ;;  %p5907_p1 = pnand %p5906_p12, %p5900_p3 }
  0x79   : > { %5435 = vmatpush3.bf16.msra.mxu0 %v6226_v41  ;;  %5459 = vmatpush3.bf16.msra.mxu1 %v6226_v41  ;;  %v1337_v62 = vand.u32 4294901760, %v1336_v58 }
  0x7a   : > { %5031 = vmatprep.mubr.f32.mxu0 %v6197_v9  ;;  %5073 = vmatprep.mubr.f32.mxu1 %v6204_v14  ;;  %v1845_v63 = vand.u32 4294901760, %v1844_v59  ;;  %v1328_v0 = vsub.f32 %v1326_v56, %v1327_v60  ;;  %v1836_v1 = vsub.f32 %v1834_v57, %v1835_v61 }
  0x7b   : > { %5437 = vmatprep.subr.bf16.mxu0 %v6228_v42  ;;  %5461 = vmatprep.subr.bf16.mxu1 %v6228_v42  ;;  %v1338_v2 = vsub.f32 %v1336_v58, %v1337_v62 }
  0x7c   : > { %v1846_v3 = vsub.f32 %v1844_v59, %v1845_v63  ;;  %v1329_v4 = vand.u32 4294901760, %v1328_v0  ;;  %v1837_v5 = vand.u32 4294901760, %v1836_v1 }
  0x7d   : > { %v1339_v6 = vand.u32 4294901760, %v1338_v2 }
  0x7e   : > { %v1847_v7 = vand.u32 4294901760, %v1846_v3 }
  0x7f   : > { %5032 = vmatmul.mubr.f32.vlgmr.msra.gmra.mrb[0].mxu0 %v6206_v15  ;;  %5074 = vmatmul.mubr.f32.vlgmr.msra.gmra.mrb[0].mxu1 %v6208_v16 }
  0x80   : > { %5439 = vmatpush3.bf16.msra.mxu0 %v6228_v42  ;;  %5463 = vmatpush3.bf16.msra.mxu1 %v6228_v42 }
  0x81   : > { %5038 = vmatprep.mubr.f32.mxu0 %v310_v17  ;;  %5080 = vmatprep.mubr.f32.mxu1 %v818_v20 }
  0x82   : > { %5441 = vmatprep.subr.bf16.mxu0 %v6202_v13  ;;  %5465 = vmatprep.subr.bf16.mxu1 %v6202_v13 }
  0x87   : > { %5039 = vmatmul.mubr.f32.vlgmr.msra.gmra.mrb[0].mxu0 %v6215_v21  ;;  %5081 = vmatmul.mubr.f32.vlgmr.msra.gmra.mrb[0].mxu1 %v6218_v22  ;;  %v2278_v22 = vsel %vm235_vm0, %v232_v19, 0 }
  0x88   : > { %5443 = vmatpush3.bf16.msra.mxu0 %v6202_v13  ;;  %5467 = vmatpush3.bf16.msra.mxu1 %v6202_v13  ;;  %v6347_v24 = vand.u32 4294901760, %v2278_v22 }
  0x89   : > { %5045 = vmatprep.mubr.f32.mxu0 %v311_v23  ;;  %5087 = vmatprep.mubr.f32.mxu1 %v819_v26 }
  0x8a   : > { %5445 = vmatprep.subr.bf16.mxu0 %v6244_v43  ;;  %5469 = vmatprep.subr.bf16.mxu1 %v6244_v43 }
  0x8f   : > { %5046 = vmatmul.mubr.f32.vlgmr.msra.gmra.mrb[0].mxu0 %v321_v27  ;;  %5088 = vmatmul.mubr.f32.vlgmr.msra.gmra.mrb[0].mxu1 %v829_v28  ;;  %v6356_v27 = vsub.f32 %v2278_v22, %v6347_v24 }
  0x90   : > { %5447 = vmatpush3.bf16.msra.mxu0 %v6244_v43  ;;  %5471 = vmatpush3.bf16.msra.mxu1 %v6244_v43 }
  0x91   : > { %5052 = vmatprep.mubr.f32.mxu0 %v6197_v9  ;;  %5094 = vmatprep.mubr.f32.mxu1 %v6204_v14  ;;  %v6364_v37 = vand.u32 4294901760, %v6356_v27 }
  0x92   : > { %5449 = vmatprep.subr.bf16.mxu0 %v6202_v13  ;;  %5473 = vmatprep.subr.bf16.mxu1 %v6202_v13 }
  0x93   : > { %v2380_v50 = vsub.f32 %v6356_v27, %v6364_v37 }
  0x97   : > { %5053 = vmatmul.mubr.f32.vlgmr.msra.gmra.mrb[0].mxu0 %v6206_v15  ;;  %5095 = vmatmul.mubr.f32.vlgmr.msra.gmra.mrb[0].mxu1 %v6208_v16 }
  0x98   : > { %5451 = vmatpush3.bf16.msra.mxu0 %v6202_v13  ;;  %5475 = vmatpush3.bf16.msra.mxu1 %v6202_v13 }
  0x99   : > { %5059 = vmatprep.mubr.f32.mxu0 %v6197_v9  ;;  %5101 = vmatprep.mubr.f32.mxu1 %v6204_v14  ;;  %v2269_v9 = vsel %vm235_vm0, %v229_v8, 0 }
  0x9a   : > { %5477 = vmatprep.subr.bf16.mxu0 %v6202_v13  ;;  %5501 = vmatprep.subr.bf16.mxu1 %v6202_v13  ;;  %v6323_v10 = vand.u32 4294901760, %v2269_v9 }
  0x9c   : > { %v6326_v11 = vsub.f32 %v2269_v9, %v6323_v10 }
  0x9e   : > { %v6329_v12 = vand.u32 4294901760, %v6326_v11 }
  0x9f   : > { %5060 = vmatmul.mubr.f32.vlgmr.msra.gmra.mrb[0].mxu0 %v6206_v15  ;;  %5102 = vmatmul.mubr.f32.vlgmr.msra.gmra.mrb[0].mxu1 %v6208_v16  ;;  %v230_v15 = vld [vmem:[#allocation5 + $0x8] sm:$0xff]  ;;  %v231_v16 = vld [vmem:[#allocation5 + $0x10] sm:$0xff] }
  0xa0   : > { %5479 = vmatpush3.bf16.msra.mxu0 %v6202_v13  ;;  %5503 = vmatpush3.bf16.msra.mxu1 %v6202_v13  ;;  %v2272_v17 = vsel %vm235_vm0, %v230_v15, 0  ;;  %v2275_v18 = vsel %vm235_vm0, %v231_v16, 0 }
  0xa1   : > { %5108 = vmatprep.mubr.f32.mxu0 %v1329_v4  ;;  %5150 = vmatprep.mubr.f32.mxu1 %v1837_v5  ;;  %v6339_v20 = vand.u32 4294901760, %v2272_v17  ;;  %v6341_v21 = vand.u32 4294901760, %v2275_v18 }
  0xa2   : > { %5481 = vmatprep.subr.bf16.mxu0 %v6226_v41  ;;  %5505 = vmatprep.subr.bf16.mxu1 %v6226_v41 }
  0xa3   : > { %5109 = vmatmul.mubr.f32.vlgmr.msra.gmra.mrb[2].mxu0 %v1339_v6  ;;  %5151 = vmatmul.mubr.f32.vlgmr.msra.gmra.mrb[2].mxu1 %v1847_v7  ;;  %v6345_v23 = vsub.f32 %v2272_v17, %v6339_v20  ;;  %v6350_v25 = vsub.f32 %v2275_v18, %v6341_v21 }
  0xa4   : > { %5483 = vmatpush3.bf16.msra.mxu0 %v6226_v41  ;;  %5507 = vmatpush3.bf16.msra.mxu1 %v6226_v41 }
  0xa5   : > { %5115 = vmatprep.mubr.f32.mxu0 %v6259_v51  ;;  %5157 = vmatprep.mubr.f32.mxu1 %v6262_v53  ;;  %v6353_v26 = vand.u32 4294901760, %v6345_v23  ;;  %v6359_v28 = vand.u32 4294901760, %v6350_v25 }
  0xa6   : > { %5485 = vmatprep.subr.bf16.mxu0 %v6228_v42  ;;  %5509 = vmatprep.subr.bf16.mxu1 %v6228_v42 }
  0xa7   : > { %v2360_v33 = vsub.f32 %v6345_v23, %v6353_v26  ;;  %v2370_v40 = vsub.f32 %v6350_v25, %v6359_v28 }
  0xa9   : > { %v6372_v47 = vand.u32 4294901760, %v2360_v33 }
  0xab   : > { %5116 = vmatmul.mubr.f32.vlgmr.msra.gmra.mrb[2].mxu0 %v6264_v54  ;;  %5158 = vmatmul.mubr.f32.vlgmr.msra.gmra.mrb[2].mxu1 %v6267_v55 }
  0xac   : > { %5487 = vmatpush3.bf16.msra.mxu0 %v6228_v42  ;;  %5511 = vmatpush3.bf16.msra.mxu1 %v6228_v42 }
  0xad   : > { %5122 = vmatprep.mubr.f32.mxu0 %v1326_v56  ;;  %5164 = vmatprep.mubr.f32.mxu1 %v1834_v57 }
  0xae   : > { %5489 = vmatprep.subr.bf16.mxu0 %v6202_v13  ;;  %5513 = vmatprep.subr.bf16.mxu1 %v6202_v13 }
  0xb3   : > { %5123 = vmatmul.mubr.f32.vlgmr.msra.gmra.mrb[2].mxu0 %v1336_v58  ;;  %5165 = vmatmul.mubr.f32.vlgmr.msra.gmra.mrb[2].mxu1 %v1844_v59 }
  0xb4   : > { %5491 = vmatpush3.bf16.msra.mxu0 %v6202_v13  ;;  %5515 = vmatpush3.bf16.msra.mxu1 %v6202_v13 }
  0xb5   : > { %5129 = vmatprep.mubr.f32.mxu0 %v1327_v60  ;;  %5171 = vmatprep.mubr.f32.mxu1 %v1835_v61 }
  0xb6   : > { %5493 = vmatprep.subr.bf16.mxu0 %v6244_v43  ;;  %5517 = vmatprep.subr.bf16.mxu1 %v6244_v43 }
  0xbb   : > { %5130 = vmatmul.mubr.f32.vlgmr.msra.gmra.mrb[2].mxu0 %v1337_v62  ;;  %5172 = vmatmul.mubr.f32.vlgmr.msra.gmra.mrb[2].mxu1 %v1845_v63  ;;  %v6383_v62 = vand.u32 4294901760, %v2380_v50 }
  0xbc   : > { %5495 = vmatpush3.bf16.msra.mxu0 %v6244_v43  ;;  %5519 = vmatpush3.bf16.msra.mxu1 %v6244_v43 }
  0xbd   : > { %5136 = vmatprep.mubr.f32.mxu0 %v6259_v51  ;;  %5178 = vmatprep.mubr.f32.mxu1 %v6262_v53 }
  0xbe   : > { %5497 = vmatprep.subr.bf16.mxu0 %v6202_v13  ;;  %5521 = vmatprep.subr.bf16.mxu1 %v6202_v13 }
  0xc3   : > { %5137 = vmatmul.mubr.f32.vlgmr.msra.gmra.mrb[2].mxu0 %v6264_v54  ;;  %5179 = vmatmul.mubr.f32.vlgmr.msra.gmra.mrb[2].mxu1 %v6267_v55 }
  0xc4   : > { %5499 = vmatpush3.bf16.msra.mxu0 %v6202_v13  ;;  %5523 = vmatpush3.bf16.msra.mxu1 %v6202_v13  ;;  %v2350_v13 = vsub.f32 %v6326_v11, %v6329_v12 }
  0xc5   : > { %5143 = vmatprep.mubr.f32.mxu0 %v6259_v51  ;;  %5185 = vmatprep.mubr.f32.mxu1 %v6262_v53 }
  0xc6   : > { %v6333_v14 = vand.u32 4294901760, %v2350_v13 }
  0xcb   : > { %5144 = vmatmul.mubr.f32.vlgmr.msra.gmra.mrb[2].mxu0 %v6264_v54  ;;  %5186 = vmatmul.mubr.f32.vlgmr.msra.gmra.mrb[2].mxu1 %v6267_v55  ;;  %v6379_v54 = vand.u32 4294901760, %v2370_v40 }
  0xcc   : > { %5192 = vmatprep.mubr.f32.mxu0 %v6333_v14  ;;  %5252 = vmatprep.mubr.f32.mxu1 %v6333_v14 }
 0x172   : > { %v5061_v29 = vpop.f32.mrb[0].mxu0  ;;  %v5103_v31 = vpop.f32.mrb[0].mxu1 }
 0x173   : > { %v2284_v30 = vand.u32 4294901760, %v5061_v29  ;;  %v734_v32 = vpop.f32.mrb[1].mxu0  ;;  %v2872_v34 = vand.u32 4294901760, %v5103_v31  ;;  %v1242_v36 = vpop.f32.mrb[1].mxu1 }
 0x174   : > { %v2281_v35 = vand.u32 4294901760, %v734_v32  ;;  %v2869_v39 = vand.u32 4294901760, %v1242_v36 }
 0x175   : > { %v2396_v38 = vsub.f32 %v5061_v29, %v2284_v30  ;;  %v2984_v41 = vsub.f32 %v5103_v31, %v2872_v34 }
 0x176   : > { %v6368_v42 = vpack.c.bf16 %v2284_v30, %v2281_v35  ;;  %v2389_v43 = vsub.f32 %v734_v32, %v2281_v35  ;;  %v6370_v45 = vpack.c.bf16 %v2872_v34, %v2869_v39  ;;  %v2977_v46 = vsub.f32 %v1242_v36, %v2869_v39 }
 0x177   : > { %v2397_v44 = vand.u32 4294901760, %v2396_v38  ;;  %v2985_v48 = vand.u32 4294901760, %v2984_v41 }
 0x178   : > { %v2390_v49 = vand.u32 4294901760, %v2389_v43  ;;  %5525 = vmatprep.subr.bf16.mxu0 %v6368_v42  ;;  %v5532_v51 = vpack.c.bf16 %v2396_v38, %v2389_v43  ;;  %v2978_v53 = vand.u32 4294901760, %v2977_v46  ;;  %5549 = vmatprep.subr.bf16.mxu1 %v6370_v45  ;;  %v5556_v55 = vpack.c.bf16 %v2984_v41, %v2977_v46 }
 0x179   : > { %v2398_v52 = vsub.f32 %v2396_v38, %v2397_v44  ;;  %5527 = vmatpush3.bf16.msra.mxu0 %v6368_v42  ;;  %v2986_v56 = vsub.f32 %v2984_v41, %v2985_v48  ;;  %5551 = vmatpush3.bf16.msra.mxu1 %v6370_v45 }
 0x17a   : > { %v2391_v57 = vsub.f32 %v2389_v43, %v2390_v49  ;;  %v5540_v58 = vpack.c.bf16 %v2397_v44, %v2390_v49  ;;  %v2979_v59 = vsub.f32 %v2977_v46, %v2978_v53  ;;  %v5564_v61 = vpack.c.bf16 %v2985_v48, %v2978_v53 }
 0x17b   : > { %v2399_v60 = vand.u32 4294901760, %v2398_v52  ;;  %v2987_v0 = vand.u32 4294901760, %v2986_v56 }
 0x17c   : > { %5193 = vmatmul.mubr.f32.vlgmr.msra.gmra.mrb[4].mxu0 %v6372_v47  ;;  %v2392_v63 = vand.u32 4294901760, %v2391_v57  ;;  %5253 = vmatmul.mubr.f32.vlgmr.msra.gmra.mrb[4].mxu1 %v6372_v47  ;;  %v2980_v1 = vand.u32 4294901760, %v2979_v59 }
 0x17d   : > { %5195 = vmatprep.mubr.f32.mxu0 %v6379_v54  ;;  %5255 = vmatprep.mubr.f32.mxu1 %v6379_v54 }
 0x17e   : > { %v5528_v2 = vpack.c.bf16 %v2399_v60, %v2392_v63  ;;  %v5552_v3 = vpack.c.bf16 %v2987_v0, %v2980_v1 }
 0x180   : > { %5196 = vmatmul.mubr.f32.gmra.mrb[6].mxu0 %v6383_v62  ;;  %5529 = vmatprep.subr.bf16.mxu0 %v5528_v2 }
 0x181   : > { %5256 = vmatmul.mubr.f32.gmra.mrb[6].mxu1 %v6383_v62  ;;  %5553 = vmatprep.subr.bf16.mxu1 %v5552_v3 }
 0x182   : > { %5531 = vmatpush3.bf16.msra.mxu0 %v5528_v2  ;;  %5555 = vmatpush3.bf16.msra.mxu1 %v5552_v3 }
 0x183   : > { %5533 = vmatprep.subr.bf16.mxu0 %v5532_v51  ;;  %5557 = vmatprep.subr.bf16.mxu1 %v5556_v55 }
 0x184   : > { %5202 = vmatprep.mubr.f32.mxu0 %v6323_v10  ;;  %5262 = vmatprep.mubr.f32.mxu1 %v6323_v10 }
 0x185   : > { %5203 = vmatmul.mubr.f32.vlgmr.msra.gmra.mrb[4].mxu0 %v6339_v20  ;;  %5263 = vmatmul.mubr.f32.vlgmr.msra.gmra.mrb[4].mxu1 %v6339_v20 }
 0x186   : > { %5535 = vmatpush3.bf16.msra.mxu0 %v5532_v51  ;;  %5559 = vmatpush3.bf16.msra.mxu1 %v5556_v55 }
 0x187   : > { %5537 = vmatprep.subr.bf16.mxu0 %v6368_v42  ;;  %5561 = vmatprep.subr.bf16.mxu1 %v6370_v45 }
 0x188   : > { %5205 = vmatprep.mubr.f32.mxu0 %v6341_v21  ;;  %5265 = vmatprep.mubr.f32.mxu1 %v6341_v21 }
 0x189   : > { %5206 = vmatmul.mubr.f32.gmra.mrb[6].mxu0 %v6347_v24  ;;  %5266 = vmatmul.mubr.f32.gmra.mrb[6].mxu1 %v6347_v24 }
 0x18a   : > { %5212 = vmatprep.mubr.f32.mxu0 %v6326_v11  ;;  %5272 = vmatprep.mubr.f32.mxu1 %v6326_v11 }
 0x18d   : > { %5213 = vmatmul.mubr.f32.vlgmr.msra.gmra.mrb[4].mxu0 %v6345_v23  ;;  %5273 = vmatmul.mubr.f32.vlgmr.msra.gmra.mrb[4].mxu1 %v6345_v23 }
 0x18e   : > { %5539 = vmatpush3.bf16.msra.mxu0 %v6368_v42  ;;  %5563 = vmatpush3.bf16.msra.mxu1 %v6370_v45 }
 0x18f   : > { %5541 = vmatprep.subr.bf16.mxu0 %v5540_v58  ;;  %5565 = vmatprep.subr.bf16.mxu1 %v5564_v61 }
 0x190   : > { %5215 = vmatprep.mubr.f32.mxu0 %v6350_v25  ;;  %5275 = vmatprep.mubr.f32.mxu1 %v6350_v25 }
 0x191   : > { %5216 = vmatmul.mubr.f32.gmra.mrb[6].mxu0 %v6356_v27  ;;  %5276 = vmatmul.mubr.f32.gmra.mrb[6].mxu1 %v6356_v27 }
 0x192   : > { %5222 = vmatprep.mubr.f32.mxu0 %v6329_v12  ;;  %5282 = vmatprep.mubr.f32.mxu1 %v6329_v12 }
 0x195   : > { %5223 = vmatmul.mubr.f32.vlgmr.msra.gmra.mrb[4].mxu0 %v6353_v26  ;;  %5283 = vmatmul.mubr.f32.vlgmr.msra.gmra.mrb[4].mxu1 %v6353_v26 }
 0x196   : > { %5543 = vmatpush3.bf16.msra.mxu0 %v5540_v58  ;;  %5567 = vmatpush3.bf16.msra.mxu1 %v5564_v61 }
 0x197   : > { %5545 = vmatprep.subr.bf16.mxu0 %v6368_v42  ;;  %5569 = vmatprep.subr.bf16.mxu1 %v6370_v45 }
 0x198   : > { %5225 = vmatprep.mubr.f32.mxu0 %v6359_v28  ;;  %5285 = vmatprep.mubr.f32.mxu1 %v6359_v28 }
 0x199   : > { %5226 = vmatmul.mubr.f32.gmra.mrb[6].mxu0 %v6364_v37  ;;  %5286 = vmatmul.mubr.f32.gmra.mrb[6].mxu1 %v6364_v37 }
 0x19a   : > { %5232 = vmatprep.mubr.f32.mxu0 %v6323_v10  ;;  %5292 = vmatprep.mubr.f32.mxu1 %v6323_v10 }
 0x19d   : > { %5233 = vmatmul.mubr.f32.vlgmr.msra.gmra.mrb[4].mxu0 %v6339_v20  ;;  %5293 = vmatmul.mubr.f32.vlgmr.msra.gmra.mrb[4].mxu1 %v6339_v20 }
 0x19e   : > { %5547 = vmatpush3.bf16.msra.mxu0 %v6368_v42  ;;  %5571 = vmatpush3.bf16.msra.mxu1 %v6370_v45  ;;  %v5145_v4 = vpop.f32.mrb[2].mxu0  ;;  %v5187_v6 = vpop.f32.mrb[2].mxu1 }
 0x19f   : > { %v3460_v5 = vand.u32 4294901760, %v5145_v4  ;;  %v1750_v7 = vpop.f32.mrb[3].mxu0  ;;  %5235 = vmatprep.mubr.f32.mxu0 %v6341_v21  ;;  %5295 = vmatprep.mubr.f32.mxu1 %v6341_v21  ;;  %v4048_v8 = vand.u32 4294901760, %v5187_v6  ;;  %v2258_v13 = vpop.f32.mrb[3].mxu1 }
 0x1a0   : > { %v3457_v9 = vand.u32 4294901760, %v1750_v7  ;;  %v4045_v16 = vand.u32 4294901760, %v2258_v13 }
 0x1a1   : > { %v3572_v15 = vsub.f32 %v5145_v4, %v3460_v5  ;;  %5236 = vmatmul.mubr.f32.gmra.mrb[6].mxu0 %v6347_v24  ;;  %5296 = vmatmul.mubr.f32.gmra.mrb[6].mxu1 %v6347_v24  ;;  %v4160_v17 = vsub.f32 %v5187_v6, %v4048_v8 }
 0x1a2   : > { %v6430_v18 = vpack.c.bf16 %v3460_v5, %v3457_v9  ;;  %v3565_v19 = vsub.f32 %v1750_v7, %v3457_v9  ;;  %5242 = vmatprep.mubr.f32.mxu0 %v6323_v10  ;;  %5302 = vmatprep.mubr.f32.mxu1 %v6323_v10  ;;  %v6434_v29 = vpack.c.bf16 %v4048_v8, %v4045_v16 }
 0x1a3   : > { %v3573_v22 = vand.u32 4294901760, %v3572_v15  ;;  %v4153_v30 = vsub.f32 %v2258_v13, %v4045_v16  ;;  %v4161_v31 = vand.u32 4294901760, %v4160_v17 }
 0x1a4   : > { %v3566_v32 = vand.u32 4294901760, %v3565_v19  ;;  %5573 = vmatprep.subr.bf16.mxu0 %v6430_v18  ;;  %v5580_v33 = vpack.c.bf16 %v3572_v15, %v3565_v19  ;;  %5597 = vmatprep.subr.bf16.mxu1 %v6434_v29 }
 0x1a5   : > { %v3574_v34 = vsub.f32 %v3572_v15, %v3573_v22  ;;  %v4154_v35 = vand.u32 4294901760, %v4153_v30  ;;  %5243 = vmatmul.mubr.f32.vlgmr.msra.gmra.mrb[4].mxu0 %v6339_v20  ;;  %5303 = vmatmul.mubr.f32.vlgmr.msra.gmra.mrb[4].mxu1 %v6339_v20  ;;  %v5604_v36 = vpack.c.bf16 %v4160_v17, %v4153_v30  ;;  %v4162_v38 = vsub.f32 %v4160_v17, %v4161_v31 }
 0x1a6   : > { %v3567_v39 = vsub.f32 %v3565_v19, %v3566_v32  ;;  %5575 = vmatpush3.bf16.msra.mxu0 %v6430_v18  ;;  %v5588_v40 = vpack.c.bf16 %v3573_v22, %v3566_v32  ;;  %5599 = vmatpush3.bf16.msra.mxu1 %v6434_v29 }
 0x1a7   : > { %v4155_v41 = vsub.f32 %v4153_v30, %v4154_v35  ;;  %5245 = vmatprep.mubr.f32.mxu0 %v6341_v21  ;;  %v3575_v42 = vand.u32 4294901760, %v3574_v34  ;;  %v5612_v43 = vpack.c.bf16 %v4161_v31, %v4154_v35  ;;  %5305 = vmatprep.mubr.f32.mxu1 %v6341_v21  ;;  %v4163_v45 = vand.u32 4294901760, %v4162_v38 }
 0x1a8   : > { %v3568_v44 = vand.u32 4294901760, %v3567_v39 }
 0x1a9   : > { %5246 = vmatmul.mubr.f32.gmra.mrb[6].mxu0 %v6347_v24  ;;  %5306 = vmatmul.mubr.f32.gmra.mrb[6].mxu1 %v6347_v24  ;;  %v4156_v46 = vand.u32 4294901760, %v4155_v41 }
 0x1aa   : > { %5312 = vmatprep.mubr.f32.mxu0 %v6333_v14  ;;  %5372 = vmatprep.mubr.f32.mxu1 %v6333_v14  ;;  %v5576_v48 = vpack.c.bf16 %v3575_v42, %v3568_v44 }
 0x1ab   : > { %v5600_v49 = vpack.c.bf16 %v4163_v45, %v4156_v46 }
 0x1ac   : > { %5577 = vmatprep.subr.bf16.mxu0 %v5576_v48 }
 0x1ad   : > { %5313 = vmatmul.mubr.f32.vlgmr.msra.gmra.mrb[8].mxu0 %v6372_v47  ;;  %5373 = vmatmul.mubr.f32.vlgmr.msra.gmra.mrb[8].mxu1 %v6372_v47 }
 0x1ae   : > { %5601 = vmatprep.subr.bf16.mxu1 %v5600_v49  ;;  %5579 = vmatpush3.bf16.msra.mxu0 %v5576_v48 }
 0x1af   : > { %5603 = vmatpush3.bf16.msra.mxu1 %v5600_v49  ;;  %5581 = vmatprep.subr.bf16.mxu0 %v5580_v33 }
 0x1b0   : > { %5605 = vmatprep.subr.bf16.mxu1 %v5604_v36  ;;  %5315 = vmatprep.mubr.f32.mxu0 %v6379_v54 }
 0x1b1   : > { %5375 = vmatprep.mubr.f32.mxu1 %v6379_v54  ;;  %5316 = vmatmul.mubr.f32.gmra.mrb[10].mxu0 %v6383_v62 }
 0x1b2   : > { %5376 = vmatmul.mubr.f32.gmra.mrb[10].mxu1 %v6383_v62  ;;  %5322 = vmatprep.mubr.f32.mxu0 %v6323_v10 }
 0x1b3   : > { %5382 = vmatprep.mubr.f32.mxu1 %v6323_v10 }
 0x1b5   : > { %5323 = vmatmul.mubr.f32.vlgmr.msra.gmra.mrb[8].mxu0 %v6339_v20 }
 0x1b6   : > { %5583 = vmatpush3.bf16.msra.mxu0 %v5580_v33  ;;  %5383 = vmatmul.mubr.f32.vlgmr.msra.gmra.mrb[8].mxu1 %v6339_v20 }
 0x1b7   : > { %5607 = vmatpush3.bf16.msra.mxu1 %v5604_v36  ;;  %5585 = vmatprep.subr.bf16.mxu0 %v6430_v18 }
 0x1b8   : > { %5609 = vmatprep.subr.bf16.mxu1 %v6434_v29  ;;  %5325 = vmatprep.mubr.f32.mxu0 %v6341_v21 }
 0x1b9   : > { %5385 = vmatprep.mubr.f32.mxu1 %v6341_v21  ;;  %5326 = vmatmul.mubr.f32.gmra.mrb[10].mxu0 %v6347_v24 }
 0x1ba   : > { %5386 = vmatmul.mubr.f32.gmra.mrb[10].mxu1 %v6347_v24  ;;  %5332 = vmatprep.mubr.f32.mxu0 %v6326_v11 }
 0x1bb   : > { %5392 = vmatprep.mubr.f32.mxu1 %v6326_v11 }
 0x1bd   : > { %5333 = vmatmul.mubr.f32.vlgmr.msra.gmra.mrb[8].mxu0 %v6345_v23 }
 0x1be   : > { %5587 = vmatpush3.bf16.msra.mxu0 %v6430_v18  ;;  %5393 = vmatmul.mubr.f32.vlgmr.msra.gmra.mrb[8].mxu1 %v6345_v23 }
 0x1bf   : > { %5611 = vmatpush3.bf16.msra.mxu1 %v6434_v29  ;;  %5589 = vmatprep.subr.bf16.mxu0 %v5588_v40 }
 0x1c0   : > { %5613 = vmatprep.subr.bf16.mxu1 %v5612_v43  ;;  %5335 = vmatprep.mubr.f32.mxu0 %v6350_v25 }
 0x1c1   : > { %5395 = vmatprep.mubr.f32.mxu1 %v6350_v25  ;;  %5336 = vmatmul.mubr.f32.gmra.mrb[10].mxu0 %v6356_v27 }
 0x1c2   : > { %5396 = vmatmul.mubr.f32.gmra.mrb[10].mxu1 %v6356_v27  ;;  %5342 = vmatprep.mubr.f32.mxu0 %v6329_v12 }
 0x1c3   : > { %5402 = vmatprep.mubr.f32.mxu1 %v6329_v12 }
 0x1c5   : > { %5343 = vmatmul.mubr.f32.vlgmr.msra.gmra.mrb[8].mxu0 %v6353_v26 }
 0x1c6   : > { %5591 = vmatpush3.bf16.msra.mxu0 %v5588_v40  ;;  %5403 = vmatmul.mubr.f32.vlgmr.msra.gmra.mrb[8].mxu1 %v6353_v26 }
 0x1c7   : > { %5615 = vmatpush3.bf16.msra.mxu1 %v5612_v43  ;;  %5593 = vmatprep.subr.bf16.mxu0 %v6430_v18 }
 0x1c8   : > { %5617 = vmatprep.subr.bf16.mxu1 %v6434_v29  ;;  %5345 = vmatprep.mubr.f32.mxu0 %v6359_v28 }
 0x1c9   : > { %5405 = vmatprep.mubr.f32.mxu1 %v6359_v28  ;;  %5346 = vmatmul.mubr.f32.gmra.mrb[10].mxu0 %v6364_v37 }
 0x1ca   : > { %5406 = vmatmul.mubr.f32.gmra.mrb[10].mxu1 %v6364_v37  ;;  %5352 = vmatprep.mubr.f32.mxu0 %v6323_v10 }
 0x1cb   : > { %5412 = vmatprep.mubr.f32.mxu1 %v6323_v10 }
 0x1cd   : > { %5353 = vmatmul.mubr.f32.vlgmr.msra.gmra.mrb[8].mxu0 %v6339_v20 }
 0x1ce   : > { %5595 = vmatpush3.bf16.msra.mxu0 %v6430_v18  ;;  %5413 = vmatmul.mubr.f32.vlgmr.msra.gmra.mrb[8].mxu1 %v6339_v20 }
 0x1cf   : > { %5619 = vmatpush3.bf16.msra.mxu1 %v6434_v29  ;;  %5355 = vmatprep.mubr.f32.mxu0 %v6341_v21 }
 0x1d0   : > { %5415 = vmatprep.mubr.f32.mxu1 %v6341_v21 }
 0x1d1   : > { %5356 = vmatmul.mubr.f32.gmra.mrb[10].mxu0 %v6347_v24 }
 0x1d2   : > { %5416 = vmatmul.mubr.f32.gmra.mrb[10].mxu1 %v6347_v24  ;;  %5362 = vmatprep.mubr.f32.mxu0 %v6323_v10 }
 0x1d3   : > { %5422 = vmatprep.mubr.f32.mxu1 %v6323_v10 }
 0x1d5   : > { %5363 = vmatmul.mubr.f32.vlgmr.msra.gmra.mrb[8].mxu0 %v6339_v20 }
 0x1d6   : > { %5423 = vmatmul.mubr.f32.vlgmr.msra.gmra.mrb[8].mxu1 %v6339_v20  ;;  %5365 = vmatprep.mubr.f32.mxu0 %v6341_v21 }
 0x1d7   : > { %5425 = vmatprep.mubr.f32.mxu1 %v6341_v21 }
 0x1d9   : > { %5366 = vmatmul.mubr.f32.gmra.mrb[10].mxu0 %v6347_v24 }
 0x1da   : > { %5426 = vmatmul.mubr.f32.gmra.mrb[10].mxu1 %v6347_v24 }
 0x278   : > { %v5244_v11 = vpop.f32.mrb[4].mxu0  ;;  %v5304_v12 = vpop.f32.mrb[4].mxu1 }
 0x279   : > { %4634 = vst.msk [vmem:[%s6503_s20 + $0x8] sm:$0xff] %vm4632_vm1, %v5244_v11  ;;  %4638 = vst.msk [vmem:[%s6503_s20 + $0x28] sm:$0xff] %vm4632_vm1, %v5304_v12  ;;  %v2846_v10 = vpop.f32.mrb[5].mxu0  ;;  %v3434_v14 = vpop.f32.mrb[5].mxu1 }
 0x27a   : > { %4633 = vst.msk [vmem:[%s6503_s20] sm:$0xff] %vm4632_vm1, %v2846_v10  ;;  %4637 = vst.msk [vmem:[%s6503_s20 + $0x20] sm:$0xff] %vm4632_vm1, %v3434_v14 }
 0x27c   : > { %v5247_v20 = vpop.f32.mrb[6].mxu0  ;;  %v5307_v21 = vpop.f32.mrb[6].mxu1 }
 0x27d   : > { %4636 = vst.msk [vmem:[%s6503_s20 + $0x18] sm:$0xff] %vm4632_vm1, %v5247_v20  ;;  %4640 = vst.msk [vmem:[%s6503_s20 + $0x38] sm:$0xff] %vm4632_vm1, %v5307_v21  ;;  %v2858_v23 = vpop.f32.mrb[7].mxu0  ;;  %v3446_v24 = vpop.f32.mrb[7].mxu1 }
 0x27e   : > { %4635 = vst.msk [vmem:[%s6503_s20 + $0x10] sm:$0xff] %vm4632_vm1, %v2858_v23  ;;  %4639 = vst.msk [vmem:[%s6503_s20 + $0x30] sm:$0xff] %vm4632_vm1, %v3446_v24 }
 0x2a8   : > { %v5364_v25 = vpop.f32.mrb[8].mxu0 }
 0x2a9   : > { %4642 = vst.msk [vmem:[%s6503_s20 + $0x48] sm:$0xff] %vm4632_vm1, %v5364_v25  ;;  %v5424_v26 = vpop.f32.mrb[8].mxu1  ;;  %v4022_v27 = vpop.f32.mrb[9].mxu0 }
 0x2aa   : > { %4646 = vst.msk [vmem:[%s6503_s20 + $0x68] sm:$0xff] %vm4632_vm1, %v5424_v26  ;;  %4641 = vst.msk [vmem:[%s6503_s20 + $0x40] sm:$0xff] %vm4632_vm1, %v4022_v27  ;;  %v4610_v28 = vpop.f32.mrb[9].mxu1 }
 0x2ab   : > { %4645 = vst.msk [vmem:[%s6503_s20 + $0x60] sm:$0xff] %vm4632_vm1, %v4610_v28 }
 0x2ac   : > { %v5367_v37 = vpop.f32.mrb[10].mxu0 }
 0x2ad   : > { %4644 = vst.msk [vmem:[%s6503_s20 + $0x58] sm:$0xff] %vm4632_vm1, %v5367_v37  ;;  %v5427_v47 = vpop.f32.mrb[10].mxu1  ;;  %v4034_v50 = vpop.f32.mrb[11].mxu0 }
 0x2ae   : > { %4648 = vst.msk [vmem:[%s6503_s20 + $0x78] sm:$0xff] %vm4632_vm1, %v5427_v47  ;;  %4643 = vst.msk [vmem:[%s6503_s20 + $0x50] sm:$0xff] %vm4632_vm1, %v4034_v50  ;;  %v4622_v51 = vpop.f32.mrb[11].mxu1 }
 0x2af   : > { %4647 = vst.msk [vmem:[%s6503_s20 + $0x70] sm:$0xff] %vm4632_vm1, %v4622_v51 }
 0x2b0   : > { %5910 = shalt.err (!%p5907_p1)
}
 0x2b1   : > { %s5911_s17 = scalar_lea.hbm %s6534_s28, 2048  ;;  %s5915_s30 = scalar_lea.hbm %s6591_s3, 4096 }
 0x2b2   : > { %p5912_p13 = scmp.ne.s32.totalorder %s6534_s28, %s5911_s17  ;;  %p5916_p4 = scmp.lt.u32.totalorder %s6534_s28, %s6591_s3 }
 0x2b3   : > { %p5917_p5 = scmp.lt.u32.totalorder %s5915_s30, %s5911_s17  ;;  %p5919_p11 = scmp.lt.u32.totalorder %s5911_s17, %s6534_s28 }
 0x2b4   : > { %p5913_p6 = pnand %p5912_p13, %p6605_p0 }
 0x2b5   : > { %p5918_p8 = por %p5917_p5, %p5916_p4 }
 0x2b6   : > { %p5914_p10 = pneg %p5913_p6 }
 0x2b7   : > { %p5920_p2 = por %p5919_p11, %p5918_p8 }
 0x2b9   : > { %p5921_p3 = pnand %p5920_p2, %p5914_p10 }
 0x2bb   : > { %5924 = shalt.err (!%p5921_p3)
}
 0x2bc   : > { %s5975_s18 = smov 128   ;;  %s5976_s20 = smov 8  }
 0x2bd   : > { %5750 = dma.vmem_to_hbm [thread:$0]  (%p6605_p0), %s6536_s8, 2048, %s6534_s28, %s4650_s16, %s5975_s18, %s5975_s18, %s5976_s20  }
 0x2be PF: > { %s4679_s7 = sand.u32 1, %s5955_s12   ;;  %p6606_p7 = scmp.ne.s32.totalorder %s6596_s19, 0 }
 0x2bf   : > { %p6607_p9 = scmp.ge.s32.totalorder %s5967_s15, 2  ;;  %s4680_s24 = scalar_lea.sflag [#allocation4], %s4679_s7 }
 0x2c1   : > { %p5764_p12 = pnand %p6607_p9, %p6606_p7 }
 0x2c3   : > { %5950 = dma.done.wait (!%p5764_p12), %s4680_s24, 2048  }
 0x2c4   : > { %5952 = vsyncadd (!%p5764_p12), %s4680_s24, 4294965248  ;;  %p17_p1 = scmp.ge.s32.totalorder %s6113_s23, 4   ;;  %s6608_s12 = smov %s5959_s13 }
 0x2c5   : > { %s6609_s13 = smov %s5963_s14  ;;  %s6610_s14 = smov %s6129_s9 }
 0x2c6   : > { %s6611_s15 = smov %s6113_s23  ;;  %19 = sbr.rel (!%p17_p1) target bundleno = 6 (0x6), region = 85 }
 0x2cd   :  { %4685 = vsyncpa [#allocation3], 1 }
 0x2ce   :  { %4687 = vsyncpa [#allocation3 + $0x1], 1 }
 0x2cf   :  { %4688 = vsyncpa [#allocation6], 1 }
 0x2d0   :  { %4689 = vsyncpa [#allocation4], 1 }
 0x2d1   :  { %4691 = vsyncpa [#allocation4 + $0x1], 1 }

</bundles_post_ra>
